<compile_context>
chip_gen: v7x
topology: tpu7x:2x2x1
jax: 0.10.0
libtpu: 0.0.40
codegen_flags: <defaults>
</compile_context>

<pallas_src>
import functools

import jax
import jax.numpy as jnp
from jax.experimental import pallas as pl
from jax.experimental.pallas import tpu as pltpu


_TARGET_TILE_BYTES = 2 * 1024 * 1024   # sweet spot: 1-4 MiB per x tile
_MAX_TILE_BYTES = 4 * 1024 * 1024
_VMEM_SLACK_BYTES = 4 * 1024 * 1024    # headroom for Mosaic internal scratch


def _round_down(v, m):
    return (v // m) * m


def _norm_block(blk, full, mult):
    """Clamp a block size to the array extent and the (8,128)-style rule:
    the block dim must be a multiple of `mult` OR equal the full extent."""
    blk = min(blk, full)
    if blk < full:
        blk = max(mult, _round_down(blk, mult))
        blk = min(blk, full)
    return blk


# -----------------------------------------------------------------------------
# Simple path: whole sequence resident per batch tile (single softmax pass).
# -----------------------------------------------------------------------------
def _attention_kernel(x_ref, v_ref, c_ref, o_ref):
    x = x_ref[...].astype(jnp.float32)                 # (TB, S, D)
    v = v_ref[...]                                     # (1, D)  f32
    c = c_ref[0]                                       # scalar bias (SMEM)

    # Fused attention score; keepdims layout throughout so the lane-reduce
    # result broadcasts back against x without XLU relayouts.
    s = jnp.maximum(jnp.sum(x * v, axis=-1, keepdims=True) + c, 0.0)  # (TB,S,1)

    # Softmax over the sequence axis (Dropout = identity in eval mode).
    m = jnp.max(s, axis=1, keepdims=True)              # (TB, 1, 1)
    e = jnp.exp(s - m)                                 # (TB, S, 1)
    denom = jnp.sum(e, axis=1, keepdims=True)          # (TB, 1, 1)
    alpha = e * pl.reciprocal(denom, approx=False)     # (TB, S, 1)

    # Weighted sum over the sequence axis -> (TB, D), lane/sublane dense.
    o_ref[...] = jnp.sum(x * alpha, axis=1).astype(o_ref.dtype)


def _attention_simple(x, v, c, block_b):
    B, S, D = x.shape
    itemsize = x.dtype.itemsize
    row_bytes = S * D * itemsize

    if block_b is None:
        # Target ~2 MiB of x per tile (1-4 MiB band), multiple of 8 rows.
        tb = max(8, _round_down(_TARGET_TILE_BYTES // row_bytes, 8))
        tb = min(tb, max(8, _round_down(_MAX_TILE_BYTES // row_bytes, 8)))
        # Keep >= ~4 grid steps (when B allows) so double-buffering overlaps
        # the DMA with compute instead of exposing it.
        tb = min(tb, max(8, _round_down(pl.cdiv(B, 4), 8)))
        tb = min(tb, B)
        n_blocks = pl.cdiv(B, tb)
        # v7x megacore: prefer an even number of batch blocks so both
        # TensorCores get equal work on the "parallel" axis.
        if n_blocks > 1 and n_blocks % 2 == 1 and tb > 8:
            tb_even = max(8, _round_down(pl.cdiv(B, n_blocks + 1), 8))
            if pl.cdiv(B, tb_even) % 2 == 0:
                tb = tb_even
    else:
        tb = _norm_block(block_b, B, 8)

    n_blocks = pl.cdiv(B, tb)

    # Generation-safe VMEM budget matched to the chosen tile.
    vmem_limit = (2 * tb * S * D * itemsize     # double-buffered x tiles
                  + 2 * tb * D * 4              # double-buffered output tiles
                  + 2 * D * 4                   # fused weight tile
                  + _VMEM_SLACK_BYTES)

    return pl.pallas_call(
        _attention_kernel,
        out_shape=jax.ShapeDtypeStruct((B, D), jnp.float32),
        grid_spec=pltpu.PrefetchScalarGridSpec(
            num_scalar_prefetch=0,
            grid=(n_blocks,),
            in_specs=[
                pl.BlockSpec((tb, S, D), lambda b: (b, 0, 0)),        # x tile
                pl.BlockSpec((1, D), lambda b: (0, 0)),               # fused weight
                pl.BlockSpec(memory_space=pltpu.MemorySpace.SMEM),    # fused bias
            ],
            out_specs=pl.BlockSpec((tb, D), lambda b: (b, 0)),
        ),
        compiler_params=pltpu.CompilerParams(
            dimension_semantics=("parallel",),
            vmem_limit_bytes=vmem_limit),
    )(x, v, c)


# -----------------------------------------------------------------------------
# Online-softmax path: tiles the sequence axis for large S*D (v7x VMEM).
# -----------------------------------------------------------------------------
def _attention_online_kernel(x_ref, v_ref, c_ref, o_ref, m_sc, l_sc, acc_sc,
                             *, seq_len, block_s):
    si = pl.program_id(1)

    @pl.when(si == 0)
    def _():
        m_sc[...] = jnp.full(m_sc.shape, -jnp.inf, m_sc.dtype)
        l_sc[...] = jnp.zeros(l_sc.shape, l_sc.dtype)
        acc_sc[...] = jnp.zeros(acc_sc.shape, acc_sc.dtype)

    x = x_ref[...].astype(jnp.float32)                 # (TB, TS, D)
    v = v_ref[...]                                     # (1, D)
    c = c_ref[0]                                       # scalar bias (SMEM)

    # Fused attention score, keepdims layout: (TB, TS, 1).
    s = jnp.maximum(jnp.sum(x * v, axis=-1, keepdims=True) + c, 0.0)

    if seq_len % block_s != 0:
        # Ragged last sequence block: zero OOB rows of x (so garbage can never
        # reach the accumulator) and force their scores to -inf (weight 0).
        pos = si * block_s + jax.lax.broadcasted_iota(jnp.int32, s.shape, 1)
        in_bounds = pos < seq_len
        x = jnp.where(in_bounds, x, 0.0)
        s = jnp.where(in_bounds, s, -jnp.inf)

    m_prev = m_sc[...]                                             # (TB, 1, 1)
    m_new = jnp.maximum(m_prev, jnp.max(s, axis=1, keepdims=True))
    corr = jnp.exp(m_prev - m_new)                                 # (TB, 1, 1)
    p = jnp.exp(s - m_new)                                         # (TB, TS, 1)
    l_sc[...] = corr * l_sc[...] + jnp.sum(p, axis=1, keepdims=True)
    acc_sc[...] = corr * acc_sc[...] + jnp.sum(x * p, axis=1, keepdims=True)
    m_sc[...] = m_new

    @pl.when(si == pl.num_programs(1) - 1)
    def _():
        out = acc_sc[...] * pl.reciprocal(l_sc[...], approx=False)  # (TB,1,D)
        o_ref[...] = out[:, 0, :].astype(o_ref.dtype)


def _attention_online(x, v, c, block_b, block_s):
    B, S, D = x.shape
    itemsize = x.dtype.itemsize
    sub_mult = 8 * max(1, 4 // itemsize)   # sublane multiple (16 for bf16)

    tb = _norm_block(block_b if block_b is not None else 8, B, 8)
    if block_s is not None:
        ts = _norm_block(block_s, S, sub_mult)
    else:
        ts = _round_down(_TARGET_TILE_BYTES // max(1, tb * D * itemsize), sub_mult)
        ts = _norm_block(max(sub_mult, ts), S, sub_mult)

    n_b = pl.cdiv(B, tb)
    n_s = pl.cdiv(S, ts)

    vmem_limit = (2 * tb * ts * D * itemsize    # double-buffered x tiles
                  + 2 * tb * D * 4              # double-buffered output tiles
                  + tb * D * 4 + 4 * tb * 4     # m/l/acc scratch
                  + 2 * D * 4                   # fused weight tile
                  + _VMEM_SLACK_BYTES)

    kernel = functools.partial(_attention_online_kernel, seq_len=S, block_s=ts)

    return pl.pallas_call(
        kernel,
        out_shape=jax.ShapeDtypeStruct((B, D), jnp.float32),
        grid_spec=pltpu.PrefetchScalarGridSpec(
            num_scalar_prefetch=0,
            grid=(n_b, n_s),
            in_specs=[
                pl.BlockSpec((tb, ts, D), lambda b, s: (b, s, 0)),     # x tile
                pl.BlockSpec((1, D), lambda b, s: (0, 0)),             # fused weight
                pl.BlockSpec(memory_space=pltpu.MemorySpace.SMEM),     # fused bias
            ],
            out_specs=pl.BlockSpec((tb, D), lambda b, s: (b, 0)),
            scratch_shapes=[
                pltpu.VMEM((tb, 1, 1), jnp.float32),   # running max
                pltpu.VMEM((tb, 1, 1), jnp.float32),   # running denom
                pltpu.VMEM((tb, 1, D), jnp.float32),   # running weighted sum
            ],
        ),
        compiler_params=pltpu.CompilerParams(
            dimension_semantics=("parallel", "arbitrary"),
            vmem_limit_bytes=vmem_limit),
    )(x, v, c)


# -----------------------------------------------------------------------------
# Public wrapper
# -----------------------------------------------------------------------------
def attention_forward(x, w1, b1, w2, b2, *, block_b=None, block_s=None):
    """x: (B, S, D) float32 or bfloat16; weights as in the PyTorch module.

    Returns (B, D) float32.  Each batch row is computed independently, which
    is what makes the ragged (un-padded) last batch block safe.
    """
    B, S, D = x.shape

    # Fuse Linear(D->A) and Linear(A->1) (both precede the ReLU, so exact):
    #   score = x @ (W1 @ w2) + (b1 @ w2 + b2)
    v = (w1 @ w2).reshape(1, D).astype(jnp.float32)        # (1, D)
    c = (b1 @ w2 + b2).reshape(1).astype(jnp.float32)      # (1,)

    row_bytes = S * D * x.dtype.itemsize
    use_online = block_s is not None or (8 * row_bytes > _MAX_TILE_BYTES and S >= 16)
    if use_online:
        return _attention_online(x, v, c, block_b, block_s)
    return _attention_simple(x, v, c, block_b)


def attention_ref(x, w1, b1, w2, b2):
    """Pure-JAX reference mirroring the PyTorch forward (eval mode)."""
    h = x @ w1 + b1                       # (B, S, A)
    s = h @ w2 + b2                       # (B, S, 1)
    s = jnp.maximum(s, 0.0)
    alpha = jax.nn.softmax(s, axis=1)     # softmax over seq
    return jnp.sum(x * alpha, axis=1)     # (B, D)


if __name__ == "__main__":
    # Small shapes consistent with the module: (batch, seq, input_dim).
    B, S, D, A = 16, 8, 128, 64

    key = jax.random.PRNGKey(0)
    k_x, k_w1, k_b1, k_w2, k_b2, k_x2 = jax.random.split(key, 6)

    # Deterministic parameter init (uniform like nn.Linear default, scaled).
    w1 = jax.random.uniform(k_w1, (D, A), minval=-1.0, maxval=1.0,
                            dtype=jnp.float32) / jnp.sqrt(D)
    b1 = jax.random.uniform(k_b1, (A,), minval=-1.0, maxval=1.0,
                            dtype=jnp.float32) / jnp.sqrt(D)
    w2 = jax.random.uniform(k_w2, (A, 1), minval=-1.0, maxval=1.0,
                            dtype=jnp.float32) / jnp.sqrt(A)
    b2 = jax.random.uniform(k_b2, (1,), minval=-1.0, maxval=1.0,
                            dtype=jnp.float32) / jnp.sqrt(A)

    # 1) f32, single-pass path (whole sequence resident), ragged batch grid.
    x = jax.random.normal(k_x, (B, S, D), dtype=jnp.float32)
    out = jax.block_until_ready(attention_forward(x, w1, b1, w2, b2))
    ref = attention_ref(x, w1, b1, w2, b2)
    assert out.shape == (B, D)
    assert jnp.allclose(out, ref, atol=1e-5, rtol=1e-5)

    # 2) Online-softmax path: ragged batch blocks (12 % 8 != 0) and ragged,
    #    masked sequence blocks (20 % 8 != 0).
    B2, S2 = 12, 20
    x2 = jax.random.normal(k_x2, (B2, S2, D), dtype=jnp.float32)
    out2 = jax.block_until_ready(
        attention_forward(x2, w1, b1, w2, b2, block_b=8, block_s=8))
    ref2 = attention_ref(x2, w1, b1, w2, b2)
    assert out2.shape == (B2, D)
    assert jnp.allclose(out2, ref2, atol=1e-5, rtol=1e-5)

    # 3) bf16 input (halves HBM bytes of x); compute stays f32 in-kernel.
    x_bf16 = x.astype(jnp.bfloat16)
    out3 = jax.block_until_ready(attention_forward(x_bf16, w1, b1, w2, b2))
    ref3 = attention_ref(x_bf16.astype(jnp.float32), w1, b1, w2, b2)
    assert jnp.allclose(out3, ref3, atol=1e-4, rtol=1e-4)

    print("KERNEL_OK")
</pallas_src>

<mosaic_0001>
module attributes {stable_mosaic.version = 11 : i64} {
  func.func @_attention_kernel(%arg0: i32, %arg1: memref<8x8x128xf32, #tpu.memory_space<vmem>>, %arg2: memref<1x128xf32, #tpu.memory_space<vmem>>, %arg3: memref<1xf32, #tpu.memory_space<smem>>, %arg4: memref<8x128xf32, #tpu.memory_space<vmem>>) attributes {dimension_semantics = [#tpu.dimension_semantics<parallel>], iteration_bounds = array<i64: 2>, scalar_prefetch = 0 : i64, scratch_operands = 0 : i64, tpu.core_type = #tpu.core_type<tc>, window_params = [{transform_indices = @transform_0, window_bounds = array<i64: 8, 8, 128>}, {pipeline_mode = #tpu.pipeline_mode<synchronous>, transform_indices = @transform_1, window_bounds = array<i64: 1, 128>}, {transform_indices = @transform_2, window_bounds = array<i64: 1>}, {transform_indices = @transform_3, window_bounds = array<i64: 8, 128>}]} {
    %c0 = arith.constant 0 : index
    %c0_0 = arith.constant 0 : index
    %c0_1 = arith.constant 0 : index
    %0 = vector.load %arg1[%c0, %c0_0, %c0_1] : memref<8x8x128xf32, #tpu.memory_space<vmem>>, vector<8x8x128xf32>
    %c0_2 = arith.constant 0 : index
    %c0_3 = arith.constant 0 : index
    %1 = vector.load %arg2[%c0_2, %c0_3] : memref<1x128xf32, #tpu.memory_space<vmem>>, vector<1x128xf32>
    %c0_4 = arith.constant 0 : index
    %2 = memref.load %arg3[%c0_4] : memref<1xf32, #tpu.memory_space<smem>>
    %3 = vector.shape_cast %1 : vector<1x128xf32> to vector<1x1x128xf32>
    %4 = vector.broadcast %3 : vector<1x1x128xf32> to vector<8x8x128xf32>
    %5 = arith.mulf %0, %4 : vector<8x8x128xf32>
    %cst = arith.constant dense<0.000000e+00> : vector<8x8xf32>
    %6 = vector.multi_reduction <add>, %5, %cst [2] : vector<8x8x128xf32> to vector<8x8xf32>
    %7 = vector.shape_cast %6 : vector<8x8xf32> to vector<8x8x1xf32>
    %8 = vector.broadcast %2 : f32 to vector<8x8x1xf32>
    %9 = arith.addf %7, %8 : vector<8x8x1xf32>
    %cst_5 = arith.constant 0.000000e+00 : f32
    %10 = vector.broadcast %cst_5 : f32 to vector<8x8x1xf32>
    %11 = arith.maximumf %9, %10 : vector<8x8x1xf32>
    %cst_6 = arith.constant dense<0xFF800000> : vector<8x1xf32>
    %12 = vector.multi_reduction <maximumf>, %11, %cst_6 [1] : vector<8x8x1xf32> to vector<8x1xf32>
    %13 = vector.shape_cast %12 : vector<8x1xf32> to vector<8x1x1xf32>
    %14 = vector.broadcast %13 : vector<8x1x1xf32> to vector<8x8x1xf32>
    %15 = arith.subf %11, %14 : vector<8x8x1xf32>
    %16 = math.exp %15 : vector<8x8x1xf32>
    %cst_7 = arith.constant dense<0.000000e+00> : vector<8x1xf32>
    %17 = vector.multi_reduction <add>, %16, %cst_7 [1] : vector<8x8x1xf32> to vector<8x1xf32>
    %18 = vector.shape_cast %17 : vector<8x1xf32> to vector<8x1x1xf32>
    %19 = tpu.reciprocal %18 : vector<8x1x1xf32> -> vector<8x1x1xf32>
    %20 = vector.broadcast %19 : vector<8x1x1xf32> to vector<8x8x1xf32>
    %21 = arith.mulf %16, %20 : vector<8x8x1xf32>
    %22 = vector.broadcast %21 : vector<8x8x1xf32> to vector<8x8x128xf32>
    %23 = arith.mulf %0, %22 : vector<8x8x128xf32>
    %cst_8 = arith.constant dense<0.000000e+00> : vector<8x128xf32>
    %24 = vector.multi_reduction <add>, %23, %cst_8 [1] : vector<8x8x128xf32> to vector<8x128xf32>
    %c0_9 = arith.constant 0 : index
    %c0_10 = arith.constant 0 : index
    %25 = vector.load %arg4[%c0_9, %c0_10] : memref<8x128xf32, #tpu.memory_space<vmem>>, vector<8x128xf32>
    tpu.vector_store %arg4[%c0_9, %c0_10], %24 {strides = array<i32>} : memref<8x128xf32, #tpu.memory_space<vmem>>, vector<8x128xf32>,
    return
  }
  func.func @transform_0(%arg0: i32) -> (i32, i32, i32) {
    %c0_i32 = arith.constant 0 : i32
    %c0_i32_0 = arith.constant 0 : i32
    %c0_i32_1 = arith.constant 0 : i32
    return %arg0, %c0_i32, %c0_i32_0 : i32, i32, i32
  }
  func.func @transform_1(%arg0: i32) -> (i32, i32) {
    %c0_i32 = arith.constant 0 : i32
    %c0_i32_0 = arith.constant 0 : i32
    %c0_i32_1 = arith.constant 0 : i32
    return %c0_i32, %c0_i32_0 : i32, i32
  }
  func.func @transform_2(%arg0: i32) -> i32 {
    %c0_i32 = arith.constant 0 : i32
    %c0_i32_0 = arith.constant 0 : i32
    return %c0_i32 : i32
  }
  func.func @transform_3(%arg0: i32) -> (i32, i32) {
    %c0_i32 = arith.constant 0 : i32
    %c0_i32_0 = arith.constant 0 : i32
    return %arg0, %c0_i32 : i32, i32
  }
}

</mosaic_0001>

<bundles_post_ra>
// kernel: tpu_custom_call.1
= control target key start
LH: loop header
LB: loop body
LE: loop exit
PB: predicated region body
PF: predicated region fallthrough
CT: control target
= control target key end

     0   :  { %s1005_s0 = inlined_call_operand.hbm [shape: f32[16,8,128], index: 0, kind: input, shape index: {}]   ;;  %s1006_s1 = inlined_call_operand.vmem [shape: f32[1,128], index: 1, kind: input, shape index: {}]   ;;  %s1007_s2 = inlined_call_operand.<no memory space> [shape: f32[1], index: 2, kind: input, shape index: {}]   ;;  %s1008_s3 = inlined_call_operand.hbm [shape: f32[16,128], index: 3, kind: output, shape index: {}]  }
   0x1   :  { %8 = sst [smem:[#allocation2]] %s1007_s2 }
   0x2   :  { %9 = vsyncpa [#allocation4], 0 }
   0x3   :  { %11 = vsyncpa [#allocation4 + $0x1], 0 }
   0x4   :  { %12 = vsyncpa [#allocation5], 0 }
   0x5   :  { %14 = vsyncpa [#allocation5 + $0x1], 0  ;;  %s768_s14 = smov 0   ;;  %s770_s15 = smov 0  }
   0x6   :  { %s772_s16 = smov 0   ;;  %s774_s17 = smov 0  }
   0x7 LB: > { %s789_s2 = sadd.s32 4294967295, %s739_s17   ;;  %s548_s18 = sadd.s32 4294967294, %s739_s17   ;;  %s739_s17 = sphi %s774_s17, %s1021_s17   ;;  %s735_s16 = sphi %s772_s16, %s1020_s16   ;;  %s731_s15 = sphi %s770_s15, %s1019_s15   ;;  %s727_s14 = sphi %s768_s14, %s1018_s14  }
   0x8   : > { %s793_s19 = sadd.s32 1, %s739_s17   ;;  %s27_s20 = sadd.s32 1, %s735_s16 }
   0x9   : > { %s24_s21 = ssub.s32 %s739_s17, %s793_s19  ;;  %p34_p0 = scmp.ne.s32.totalorder %s735_s16, %s731_s15 }
   0xa   : > { %p25_p1 = scmp.eq.s32.totalorder %s24_s21, 0  ;;  %p35_p2 = scmp.eq.s32.totalorder %s739_s17, 0 }
   0xb   : > { %p40_p3 = scmp.ne.s32.totalorder %s731_s15, %s727_s14  ;;  %p41_p4 = scmp.eq.s32.totalorder %s789_s2, 0 }
   0xc   : > { %s805_s22 = scalar_select %p25_p1, %s735_s16, %s27_s20  }
   0xd   : > { %p807_p5 = por %p35_p2, %p34_p0  ;;  %p811_p6 = por %p41_p4, %p40_p3 }
   0xe   : > { %p106_p7 = scmp.eq.s32.totalorder %s789_s2, 1  ;;  %p112_p8 = scmp.eq.s32.totalorder %s548_s18, 1 }
   0xf   : > { %p575_p10 = scmp.lt.s32.totalorder %s739_s17, 2  ;;  %s138_s27 = sand.u32 1, %s735_s16  }
  0x10   : > { %p818_p11 = por %p106_p7, %p34_p0  ;;  %p822_p12 = por %p112_p8, %p40_p3 }
  0x11   : > { %s562_s28 = sshll.u32 %s739_s17, 10  ;;  %s551_s29 = sshll.u32 %s138_s27, 6 }
  0x12   : > { %s1012_s25 = scalar_select %p818_p11, 1, 0 }
  0x13   : > { %s1013_s26 = scalar_select %p822_p12, 1, 0 }
  0x14   : > { %s831_s5 = scalar_lea.hbm %s1005_s0, %s562_s28  ;;  %s142_s6 = scalar_lea.vmem [#allocation3], %s551_s29 }
  0x15   : > { %s149_s7 = sshll.u32 %s142_s6, 4  ;;  %p835_p13 = pnand %p575_p10, %p807_p5  ;;  %s839_s7 = int_to_ptr.vmem [resolvable:$true] %s149_s7 }
  0x16   : > { %s841_s9 = scalar_lea.sflag [#allocation4], %s138_s27  ;;  %s643_s10 = scalar_lea.hbm %s831_s5, 1024 }
  0x17   : > { %p644_p0 = scmp.ne.s32.totalorder %s831_s5, %s643_s10  ;;  %p645_p1 = pneg %p835_p13 }
  0x18   : > { %s648_s13 = scalar_lea.hbm %s1005_s0, 2048  ;;  %p649_p4 = scmp.lt.u32.totalorder %s831_s5, %s1005_s0 }
  0x19   : > { %p646_p2 = pnand %p645_p1, %p644_p0  ;;  %p650_p5 = scmp.lt.u32.totalorder %s648_s13, %s643_s10 }
  0x1a   : > { %p652_p8 = scmp.lt.u32.totalorder %s643_s10, %s831_s5 }
  0x1b   : > { %p647_p3 = pneg %p646_p2  ;;  %p651_p7 = por %p650_p5, %p649_p4 }
  0x1d   : > { %p653_p10 = por %p652_p8, %p651_p7 }
  0x1f   : > { %p654_p9 = pnand %p653_p10, %p647_p3 }
  0x21   : > { %657 = shalt.err (!%p654_p9)
}
  0x22   : > { %s658_s21 = scalar_lea.vmem %s839_s7, 1024  ;;  %s741_s23 = smov [#allocation3]  }
  0x23   : > { %p659_p0 = scmp.ne.s32.totalorder %s839_s7, %s658_s21  ;;  %s663_s27 = sshll.u32 %s741_s23, 4  ;;  %s664_s27 = int_to_ptr.vmem [resolvable:$false] %s663_s27 }
  0x24   : > { %s665_s28 = scalar_lea.vmem %s664_s27, 2048  ;;  %p666_p11 = scmp.lt.s32.totalorder %s839_s7, %s664_s27 }
  0x25   : > { %p661_p2 = pnand %p659_p0, %p645_p1  ;;  %p667_p4 = scmp.lt.s32.totalorder %s665_s28, %s658_s21 }
  0x27   : > { %p662_p12 = pneg %p661_p2  ;;  %p668_p5 = por %p667_p4, %p666_p11 }
  0x29   : > { %p669_p7 = pnand %p668_p5, %p662_p12 }
  0x2b   : > { %672 = shalt.err (!%p669_p7)
}
  0x2c   : > { %s742_s29 = smov 128   ;;  %s743_s30 = smov 8  }
  0x2d   : > { %570 = dma.hbm_to_vmem [thread:$0]  (!%p835_p13), %s831_s5, 1024, %s839_s7, %s841_s9, %s742_s29, %s742_s29, %s743_s30  }
  0x2e   : > { %p554_p9 = scmp.ge.s32.totalorder %s739_s17, 1  ;;  %p157_p1 = scmp.lt.s32.totalorder %s739_s17, 3 }
  0x30   : > { %p158_p3 = pnand %p554_p9, %p157_p1 }
  0x31   : > { %s872_s4 = sand.u32 (!%p158_p3), 1, %s731_s15  }
  0x32   : > { %161 = sbr.rel (%p158_p3) target bundleno = 302 (0x12e), region = 32  ;;  %s555_s6 = sshll.u32 (!%p158_p3), %s872_s4, 6 }
  0x33   : > { %s164_s10 = scalar_lea.sflag (!%p158_p3), [#allocation4], %s872_s4  ;;  %s167_s11 = scalar_lea.vmem (!%p158_p3), [#allocation3], %s555_s6 }
  0x39   : > { %718 = dma.done.wait (%p811_p6), %s164_s10, 1024  }
  0x3a   : > { %720 = vsyncadd (%p811_p6), %s164_s10, 4294966272  ;;  %v880_v0 = vld [vmem:[%s167_s11 + $0x10] sm:$0xff]  ;;  %v557_v1 = vld [vmem:[%s1006_s1] ss:$0 sm:$0xff]  ;;  %s200_s24 = sld [smem:[#allocation2]]  ;;  %vm448_vm0 = vcmask 1041409  }
  0x3b   : > { %v885_v2 = vld [vmem:[%s167_s11] sm:$0xff]  ;;  %v209_v3 = vmul.f32 %v557_v1, %v880_v0  ;;  %v889_v5 = vld [vmem:[%s167_s11 + $0x18] sm:$0xff]  ;;  %v891_v6 = vld [vmem:[%s167_s11 + $0x8] sm:$0xff]  ;;  %vm450_vm1 = vcmask 1042434   ;;  %vm452_vm2 = vcmask 1043459   ;;  %s556_s8 = sshll.u32 %s872_s4, 3 }
  0x3c   : > { %v207_v4 = vmul.f32 %v557_v1, %v885_v2  ;;  %v210_v7 = vmul.f32 %v557_v1, %v889_v5  ;;  %v208_v8 = vmul.f32 %v557_v1, %v891_v6  ;;  %v895_v9 = vld [vmem:[%s167_s11 + $0x28] sm:$0xff]  ;;  %v897_v10 = vld [vmem:[%s167_s11 + $0x20] sm:$0xff]  ;;  %v901_v13 = vld [vmem:[%s167_s11 + $0x38] sm:$0xff]  ;;  %vm454_vm3 = vcmask 1044484   ;;  %s559_s9 = sshll.u32 %s789_s2, 7  ;;  %s189_s12 = scalar_lea.vmem [#allocation6], %s556_s8 }
  0x3d   : > { %219 = vadd.xlane.f32.xlu1 %v209_v3  ;;  %v212_v11 = vmul.f32 %v557_v1, %v895_v9  ;;  %v211_v12 = vmul.f32 %v557_v1, %v897_v10  ;;  %v903_v14 = vld [vmem:[%s167_s11 + $0x30] sm:$0xff]  ;;  %v214_v15 = vmul.f32 %v557_v1, %v901_v13  ;;  %vm456_vm4 = vcmask 1045509   ;;  %s478_s13 = sshll.u32 %s189_s12, 4  ;;  %s961_s21 = scalar_lea.hbm %s1008_s3, %s559_s9  ;;  %s963_s13 = int_to_ptr.vmem [resolvable:$true] %s478_s13 }
  0x3e   : > { %215 = vadd.xlane.f32.xlu0 %v207_v4  ;;  %v213_v16 = vmul.f32 %v557_v1, %v903_v14  ;;  %vm458_vm5 = vcmask 1046534   ;;  %vm460_vm6 = vcmask 1047559   ;;  %s465_s23 = scalar_lea.sflag [#allocation5], %s872_s4  ;;  %s673_s2 = scalar_lea.vmem %s963_s13, 128 }
  0x3f   : > { %p674_p6 = scmp.ne.s32.totalorder %s963_s13, %s673_s2  ;;  %p1015_p11 = scmp.ne.s32.totalorder %s1012_s25, 0 }
  0x40   : > { %v231_v17 = vstv %s200_s24  ;;  %s744_s27 = smov [#allocation6]  }
  0x41   : > { %221 = vadd.xlane.f32.xlu1 %v210_v7  ;;  %p675_p12 = pnand %p674_p6, %p1015_p11  ;;  %s677_s28 = sshll.u32 %s744_s27, 4  ;;  %s678_s28 = int_to_ptr.vmem [resolvable:$false] %s677_s28 }
  0x42   : > { %217 = vadd.xlane.f32.xlu0 %v208_v8  ;;  %s679_s29 = scalar_lea.vmem %s678_s28, 256  ;;  %p680_p8 = scmp.lt.s32.totalorder %s963_s13, %s678_s28 }
  0x43   : > { %p676_p13 = pneg %p675_p12  ;;  %p681_p10 = scmp.lt.s32.totalorder %s679_s29, %s673_s2 }
  0x45   : > { %225 = vadd.xlane.f32.xlu1 %v212_v11  ;;  %p682_p0 = por %p681_p10, %p680_p8 }
  0x46   : > { %223 = vadd.xlane.f32.xlu0 %v211_v12 }
  0x47   : > { %p683_p2 = pnand %p682_p0, %p676_p13 }
  0x49   : > { %229 = vadd.xlane.f32.xlu1 %v214_v15 }
  0x4a   : > { %227 = vadd.xlane.f32.xlu0 %v213_v16 }
  0xca   : > { %v220_v18 = vpop.xlane.xlu1 %219 }
  0xcb   : > { %v216_v19 = vpop.xlane.xlu0 %215  ;;  %v234_v20 = vadd.f32 %v231_v17, %v220_v18 }
  0xcc   : > { %v232_v21 = vadd.f32 %v231_v17, %v216_v19 }
  0xcd   : > { %v242_v22 = vmax.f32 %v234_v20, 0.0 }
  0xce   : > { %v240_v23 = vmax.f32 %v232_v21, 0.0  ;;  %v222_v24 = vpop.xlane.xlu1 %221 }
  0xcf   : > { %v218_v25 = vpop.xlane.xlu0 %217  ;;  %v260_v26 = vrot.slane %v242_v22, 4  ;;  %v235_v28 = vadd.f32 %v231_v17, %v222_v24 }
  0xd0   : > { %v248_v27 = vrot.slane %v240_v23, 4  ;;  %v233_v29 = vadd.f32 %v231_v17, %v218_v25 }
  0xd1   : > { %v261_v30 = vmax.f32 %v242_v22, %v260_v26  ;;  %v243_v32 = vmax.f32 %v235_v28, 0.0 }
  0xd2   : > { %v249_v31 = vmax.f32 %v240_v23, %v248_v27  ;;  %v241_v33 = vmax.f32 %v233_v29, 0.0  ;;  %v226_v34 = vpop.xlane.xlu1 %225 }
  0xd3   : > { %v224_v35 = vpop.xlane.xlu0 %223  ;;  %v262_v36 = vrot.slane %v261_v30, 2  ;;  %v266_v38 = vrot.slane %v243_v32, 4  ;;  %v237_v40 = vadd.f32 %v231_v17, %v226_v34 }
  0xd4   : > { %v250_v37 = vrot.slane %v249_v31, 2  ;;  %v254_v39 = vrot.slane %v241_v33, 4  ;;  %v236_v41 = vadd.f32 %v231_v17, %v224_v35 }
  0xd5   : > { %v263_v42 = vmax.f32 %v261_v30, %v262_v36  ;;  %v267_v44 = vmax.f32 %v243_v32, %v266_v38  ;;  %v245_v46 = vmax.f32 %v237_v40, 0.0 }
  0xd6   : > { %v251_v43 = vmax.f32 %v249_v31, %v250_v37  ;;  %v255_v45 = vmax.f32 %v241_v33, %v254_v39  ;;  %v244_v47 = vmax.f32 %v236_v41, 0.0  ;;  %v230_v48 = vpop.xlane.xlu1 %229 }
  0xd7   : > { %v228_v49 = vpop.xlane.xlu0 %227  ;;  %v264_v50 = vrot.slane %v263_v42, 1  ;;  %v268_v52 = vrot.slane %v267_v44, 2  ;;  %v278_v54 = vrot.slane %v245_v46, 4  ;;  %v239_v56 = vadd.f32 %v231_v17, %v230_v48 }
  0xd8   : > { %v252_v51 = vrot.slane %v251_v43, 1  ;;  %v256_v53 = vrot.slane %v255_v45, 2  ;;  %v272_v55 = vrot.slane %v244_v47, 4  ;;  %v238_v57 = vadd.f32 %v231_v17, %v228_v49 }
  0xd9   : > { %v265_v58 = vmax.f32 %v263_v42, %v264_v50  ;;  %v269_v60 = vmax.f32 %v267_v44, %v268_v52  ;;  %v279_v62 = vmax.f32 %v245_v46, %v278_v54  ;;  %v247_v1 = vmax.f32 %v239_v56, 0.0 }
  0xda   : > { %v253_v59 = vmax.f32 %v251_v43, %v252_v51  ;;  %v257_v61 = vmax.f32 %v255_v45, %v256_v53  ;;  %v273_v63 = vmax.f32 %v244_v47, %v272_v55  ;;  %v246_v3 = vmax.f32 %v238_v57, 0.0 }
  0xdb   : > { %v298_v4 = vsub.f32 %v242_v22, %v265_v58  ;;  %v270_v8 = vrot.slane %v269_v60, 1  ;;  %v280_v12 = vrot.slane %v279_v62, 2  ;;  %v290_v16 = vrot.slane %v247_v1, 4 }
  0xdc   : > { %v296_v7 = vsub.f32 %v240_v23, %v253_v59  ;;  %v258_v11 = vrot.slane %v257_v61, 1  ;;  %v274_v15 = vrot.slane %v273_v63, 2  ;;  %v284_v18 = vrot.slane %v246_v3, 4 }
  0xdd   : > { %v308_v19 = vmul.f32 1.442695, %v298_v4  ;;  %v271_v21 = vmax.f32 %v269_v60, %v270_v8  ;;  %v281_v24 = vmax.f32 %v279_v62, %v280_v12  ;;  %v291_v26 = vmax.f32 %v247_v1, %v290_v16 }
  0xde   : > { %v304_v20 = vmul.f32 1.442695, %v296_v7  ;;  %v259_v17 = vmax.f32 %v257_v61, %v258_v11  ;;  %v275_v25 = vmax.f32 %v273_v63, %v274_v15  ;;  %v285_v27 = vmax.f32 %v246_v3, %v284_v18 }
  0xdf   : > { %611 = vpow2.f32 %v308_v19  ;;  %v299_v28 = vsub.f32 %v243_v32, %v271_v21  ;;  %v282_v22 = vrot.slane %v281_v24, 1  ;;  %v292_v30 = vrot.slane %v291_v26, 2 }
  0xe0   : > { %v297_v29 = vsub.f32 %v241_v33, %v259_v17  ;;  %613 = vpow2.f32 %v304_v20  ;;  %v276_v23 = vrot.slane %v275_v25, 1  ;;  %v286_v35 = vrot.slane %v285_v27, 2 }
  0xe1   : > { %v310_v31 = vmul.f32 1.442695, %v299_v28  ;;  %v283_v36 = vmax.f32 %v281_v24, %v282_v22  ;;  %v293_v38 = vmax.f32 %v291_v26, %v292_v30 }
  0xe2   : > { %v306_v34 = vmul.f32 1.442695, %v297_v29  ;;  %v277_v37 = vmax.f32 %v275_v25, %v276_v23  ;;  %v287_v39 = vmax.f32 %v285_v27, %v286_v35 }
  0xe3   : > { %615 = vpow2.f32 %v310_v31  ;;  %v301_v40 = vsub.f32 %v245_v46, %v283_v36  ;;  %v294_v42 = vrot.slane %v293_v38, 1 }
  0xe4   : > { %617 = vpow2.f32 %v306_v34  ;;  %v300_v41 = vsub.f32 %v244_v47, %v277_v37  ;;  %v288_v43 = vrot.slane %v287_v39, 1 }
  0xe5   : > { %v314_v44 = vmul.f32 1.442695, %v301_v40  ;;  %v295_v33 = vmax.f32 %v293_v38, %v294_v42 }
  0xe6   : > { %v312_v32 = vmul.f32 1.442695, %v300_v41  ;;  %v289_v45 = vmax.f32 %v287_v39, %v288_v43 }
  0xe7   : > { %619 = vpow2.f32 %v314_v44  ;;  %v303_v48 = vsub.f32 %v247_v1, %v295_v33 }
  0xe8   : > { %621 = vpow2.f32 %v312_v32  ;;  %v302_v50 = vsub.f32 %v246_v3, %v289_v45 }
  0xe9   : > { %v907_v49 = vpop.eup %611  ;;  %v318_v53 = vmul.f32 1.442695, %v303_v48 }
  0xea   : > { %v909_v51 = vpop.eup %613  ;;  %v332_v52 = vrot.slane %v907_v49, 4  ;;  %v316_v47 = vmul.f32 1.442695, %v302_v50 }
  0xeb   : > { %v320_v46 = vrot.slane %v909_v51, 4  ;;  %623 = vpow2.f32 %v318_v53 }
  0xec   : > { %v333_v54 = vadd.f32 %v907_v49, %v332_v52  ;;  %625 = vpow2.f32 %v316_v47 }
  0xed   : > { %v914_v55 = vpop.eup %615  ;;  %v321_v56 = vadd.f32 %v909_v51, %v320_v46 }
  0xee   : > { %v917_v57 = vpop.eup %617  ;;  %v334_v58 = vrot.slane %v333_v54, 2  ;;  %v338_v59 = vrot.slane %v914_v55, 4 }
  0xef   : > { %v322_v60 = vrot.slane %v321_v56, 2  ;;  %v326_v61 = vrot.slane %v917_v57, 4 }
  0xf0   : > { %v335_v62 = vadd.f32 %v334_v58, %v333_v54  ;;  %v339_v63 = vadd.f32 %v914_v55, %v338_v59 }
  0xf1   : > { %v323_v1 = vadd.f32 %v322_v60, %v321_v56  ;;  %v327_v3 = vadd.f32 %v917_v57, %v326_v61  ;;  %v923_v4 = vpop.eup %619 }
  0xf2   : > { %v336_v7 = vrot.slane %v335_v62, 1  ;;  %v340_v8 = vrot.slane %v339_v63, 2  ;;  %v925_v11 = vpop.eup %621  ;;  %v350_v16 = vrot.slane %v923_v4, 4 }
  0xf3   : > { %v324_v12 = vrot.slane %v323_v1, 1  ;;  %v328_v15 = vrot.slane %v327_v3, 2  ;;  %v344_v20 = vrot.slane %v925_v11, 4 }
  0xf4   : > { %v337_v18 = vadd.f32 %v336_v7, %v335_v62  ;;  %v341_v19 = vadd.f32 %v340_v8, %v339_v63  ;;  %v351_v24 = vadd.f32 %v923_v4, %v350_v16 }
  0xf5   : > { %v325_v21 = vadd.f32 %v324_v12, %v323_v1  ;;  %v329_v17 = vadd.f32 %v328_v15, %v327_v3  ;;  %v930_v25 = vpop.eup %623  ;;  %v345_v27 = vadd.f32 %v925_v11, %v344_v20 }
  0xf6   : > { %627 = vrcp.f32 %v337_v18  ;;  %v342_v26 = vrot.slane %v341_v19, 1  ;;  %v933_v28 = vpop.eup %625  ;;  %v352_v22 = vrot.slane %v351_v24, 2  ;;  %v362_v23 = vrot.slane %v930_v25, 4 }
  0xf7   : > { %629 = vrcp.f32 %v325_v21  ;;  %v330_v29 = vrot.slane %v329_v17, 1  ;;  %v346_v31 = vrot.slane %v345_v27, 2  ;;  %v356_v34 = vrot.slane %v933_v28, 4 }
  0xf8   : > { %v343_v30 = vadd.f32 %v342_v26, %v341_v19  ;;  %v353_v36 = vadd.f32 %v352_v22, %v351_v24  ;;  %v363_v37 = vadd.f32 %v930_v25, %v362_v23 }
  0xf9   : > { %v331_v35 = vadd.f32 %v330_v29, %v329_v17  ;;  %v347_v38 = vadd.f32 %v346_v31, %v345_v27  ;;  %v357_v39 = vadd.f32 %v933_v28, %v356_v34 }
  0xfa   : > { %631 = vrcp.f32 %v343_v30  ;;  %v354_v40 = vrot.slane %v353_v36, 1  ;;  %v364_v41 = vrot.slane %v363_v37, 2 }
  0xfb   : > { %633 = vrcp.f32 %v331_v35  ;;  %v348_v42 = vrot.slane %v347_v38, 1  ;;  %v358_v43 = vrot.slane %v357_v39, 2 }
  0xfc   : > { %v355_v44 = vadd.f32 %v354_v40, %v353_v36  ;;  %v365_v32 = vadd.f32 %v364_v41, %v363_v37 }
  0xfd   : > { %v349_v33 = vadd.f32 %v348_v42, %v347_v38  ;;  %v359_v45 = vadd.f32 %v358_v43, %v357_v39 }
  0xfe   : > { %635 = vrcp.f32 %v355_v44  ;;  %v366_v48 = vrot.slane %v365_v32, 1 }
  0xff   : > { %637 = vrcp.f32 %v349_v33  ;;  %v360_v52 = vrot.slane %v359_v45, 1 }
 0x100   : > { %v628_v50 = vpop.eup %627  ;;  %v367_v47 = vadd.f32 %v366_v48, %v365_v32 }
 0x101   : > { %v630_v53 = vpop.eup %629  ;;  %v378_v46 = vmul.f32 %v628_v50, %v907_v49  ;;  %v361_v56 = vadd.f32 %v360_v52, %v359_v45 }
 0x102   : > { %v376_v54 = vmul.f32 %v630_v53, %v909_v51  ;;  %639 = vrcp.f32 %v367_v47 }
 0x103   : > { %v386_v58 = vmul.f32 %v378_v46, %v880_v0  ;;  %641 = vrcp.f32 %v361_v56 }
 0x104   : > { %v632_v59 = vpop.eup %631  ;;  %v384_v60 = vmul.f32 %v376_v54, %v885_v2 }
 0x105   : > { %v634_v61 = vpop.eup %633  ;;  %v379_v62 = vmul.f32 %v632_v59, %v914_v55  ;;  %v404_v63 = vrot.slane %v386_v58, 4 }
 0x106   : > { %v377_v1 = vmul.f32 %v634_v61, %v917_v57  ;;  %v392_v3 = vrot.slane %v384_v60, 4 }
 0x107   : > { %v387_v49 = vmul.f32 %v379_v62, %v889_v5  ;;  %v405_v7 = vadd.f32 %v404_v63, %v386_v58 }
 0x108   : > { %v385_v51 = vmul.f32 %v377_v1, %v891_v6  ;;  %v393_v8 = vadd.f32 %v392_v3, %v384_v60  ;;  %v636_v12 = vpop.eup %635 }
 0x109   : > { %v406_v15 = vrot.slane %v405_v7, 2  ;;  %v410_v0 = vrot.slane %v387_v49, 4  ;;  %v638_v16 = vpop.eup %637  ;;  %v381_v18 = vmul.f32 %v636_v12, %v923_v4 }
 0x10a   : > { %v394_v2 = vrot.slane %v393_v8, 2  ;;  %v398_v19 = vrot.slane %v385_v51, 4  ;;  %v380_v55 = vmul.f32 %v638_v16, %v925_v11 }
 0x10b   : > { %v411_v20 = vadd.f32 %v410_v0, %v387_v49  ;;  %v389_v57 = vmul.f32 %v381_v18, %v895_v9  ;;  %v407_v6 = vadd.f32 %v406_v15, %v405_v7 }
 0x10c   : > { %v395_v21 = vadd.f32 %v394_v2, %v393_v8  ;;  %v399_v17 = vadd.f32 %v398_v19, %v385_v51  ;;  %v640_v5 = vpop.eup %639  ;;  %v388_v24 = vmul.f32 %v380_v55, %v897_v10 }
 0x10d   : > { %v412_v26 = vrot.slane %v411_v20, 2  ;;  %v642_v27 = vpop.eup %641  ;;  %v383_v29 = vmul.f32 %v640_v5, %v930_v25  ;;  %v422_v23 = vrot.slane %v389_v57, 4  ;;  %v408_v37 = vrot.slane %v407_v6, 1 }
 0x10e   : > { %v400_v22 = vrot.slane %v399_v17, 2  ;;  %v382_v4 = vmul.f32 %v642_v27, %v933_v28  ;;  %v416_v31 = vrot.slane %v388_v24, 4  ;;  %v396_v34 = vrot.slane %v395_v21, 1 }
 0x10f   : > { %v413_v30 = vadd.f32 %v412_v26, %v411_v20  ;;  %v391_v11 = vmul.f32 %v383_v29, %v901_v13  ;;  %v423_v35 = vadd.f32 %v422_v23, %v389_v57  ;;  %v409_v32 = vadd.f32 %v408_v37, %v407_v6 }
 0x110   : > { %v401_v9 = vadd.f32 %v400_v22, %v399_v17  ;;  %v390_v36 = vmul.f32 %v382_v4, %v903_v14  ;;  %v417_v10 = vadd.f32 %v416_v31, %v388_v24  ;;  %v397_v28 = vadd.f32 %v396_v34, %v395_v21 }
 0x111   : > { %v414_v39 = vrot.slane %v413_v30, 1  ;;  %v424_v40 = vrot.slane %v423_v35, 2  ;;  %v434_v25 = vrot.slane %v391_v11, 4 }
 0x112   : > { %v402_v38 = vrot.slane %v401_v9, 1  ;;  %v418_v41 = vrot.slane %v417_v10, 2  ;;  %v428_v42 = vrot.slane %v390_v36, 4 }
 0x113   : > { %v425_v44 = vadd.f32 %v424_v40, %v423_v35  ;;  %v435_v13 = vadd.f32 %v434_v25, %v391_v11  ;;  %v415_v14 = vadd.f32 %v414_v39, %v413_v30 }
 0x114   : > { %v403_v43 = vadd.f32 %v402_v38, %v401_v9  ;;  %v419_v33 = vadd.f32 %v418_v41, %v417_v10  ;;  %v429_v45 = vadd.f32 %v428_v42, %v390_v36 }
 0x115   : > { %v426_v48 = vrot.slane %v425_v44, 1  ;;  %v436_v50 = vrot.slane %v435_v13, 2 }
 0x116   : > { %v449_v52 = vsel %vm448_vm0, %v403_v43, %v397_v28  ;;  %v420_v53 = vrot.slane %v419_v33, 1  ;;  %v430_v46 = vrot.slane %v429_v45, 2 }
 0x117   : > { %v451_v47 = vsel %vm450_vm1, %v409_v32, %v449_v52  ;;  %v437_v54 = vadd.f32 %v436_v50, %v435_v13  ;;  %v427_v60 = vadd.f32 %v426_v48, %v425_v44 }
 0x118   : > { %v453_v56 = vsel %vm452_vm2, %v415_v14, %v451_v47  ;;  %v421_v58 = vadd.f32 %v420_v53, %v419_v33  ;;  %v431_v59 = vadd.f32 %v430_v46, %v429_v45 }
 0x119   : > { %v438_v61 = vrot.slane %v437_v54, 1 }
 0x11a   : > { %v432_v62 = vrot.slane %v431_v59, 1  ;;  %v455_v63 = vsel %vm454_vm3, %v421_v58, %v453_v56 }
 0x11b   : > { %v439_v1 = vadd.f32 %v438_v61, %v437_v54  ;;  %v457_v49 = vsel %vm456_vm4, %v427_v60, %v455_v63 }
 0x11c   : > { %v433_v3 = vadd.f32 %v432_v62, %v431_v59 }
 0x11e   : > { %v459_v7 = vsel %vm458_vm5, %v433_v3, %v457_v49 }
 0x11f   : > { %v461_v51 = vsel %vm460_vm6, %v439_v1, %v459_v7 }
 0x120   : > { %463 = vst [vmem:[%s189_s12] sm:$0xff] %v461_v51 }
 0x121   : > { %686 = shalt.err (!%p683_p2)
}
 0x122   : > { %s687_s30 = scalar_lea.hbm %s961_s21, 128  ;;  %s691_s10 = scalar_lea.hbm %s1008_s3, 256 }
 0x123   : > { %p688_p4 = scmp.ne.s32.totalorder %s961_s21, %s687_s30  ;;  %p692_p9 = scmp.lt.u32.totalorder %s961_s21, %s1008_s3 }
 0x124   : > { %p693_p1 = scmp.lt.u32.totalorder %s691_s10, %s687_s30  ;;  %p695_p6 = scmp.lt.u32.totalorder %s687_s30, %s961_s21 }
 0x125   : > { %p689_p5 = pnand %p688_p4, %p1015_p11 }
 0x126   : > { %p694_p3 = por %p693_p1, %p692_p9 }
 0x127   : > { %p690_p7 = pneg %p689_p5 }
 0x128   : > { %p696_p12 = por %p695_p6, %p694_p3 }
 0x12a   : > { %p697_p13 = pnand %p696_p12, %p690_p7 }
 0x12c   : > { %700 = shalt.err (!%p697_p13)
}
 0x12d   : > { %565 = dma.vmem_to_hbm [thread:$0]  (%p1015_p11), %s963_s13, 128, %s961_s21, %s465_s23  }
 0x12e PF: > { %s490_s7 = sand.u32 1, %s727_s14   ;;  %p1016_p8 = scmp.ne.s32.totalorder %s1013_s26, 0 }
 0x12f   : > { %p1017_p10 = scmp.ge.s32.totalorder %s739_s17, 2  ;;  %s491_s24 = scalar_lea.sflag [#allocation5], %s490_s7 }
 0x131   : > { %p572_p0 = pnand %p1017_p10, %p1016_p8 }
 0x133   : > { %722 = dma.done.wait (!%p572_p0), %s491_s24, 128  }
 0x134   : > { %724 = vsyncadd (!%p572_p0), %s491_s24, 4294967168  ;;  %p17_p2 = scmp.ge.s32.totalorder %s793_s19, 4   ;;  %s1018_s14 = smov %s731_s15 }
 0x135   : > { %s1019_s15 = smov %s735_s16  ;;  %s1020_s16 = smov %s805_s22 }
 0x136   : > { %s1021_s17 = smov %s793_s19  ;;  %19 = sbr.rel (!%p17_p2) target bundleno = 7 (0x7), region = 77 }
 0x13d   :  { %496 = vsyncpa [#allocation4], 1 }
 0x13e   :  { %498 = vsyncpa [#allocation4 + $0x1], 1 }
 0x13f   :  { %499 = vsyncpa [#allocation5], 1 }
 0x140   :  { %501 = vsyncpa [#allocation5 + $0x1], 1 }

</bundles_post_ra>
